<compile_context>
chip_gen: v5e
topology: v5e:2x2
jax: 0.10.0
libtpu: 0.0.40
codegen_flags: <defaults>
</compile_context>

<pallas_src>
import jax
import jax.numpy as jnp
from jax import lax
from jax.experimental import pallas as pl
from jax.experimental.pallas import tpu as pltpu


# ----------------------------------------------------------------------------- #
# Pallas kernel: one fused matmul + single bias add per row-tile
# ----------------------------------------------------------------------------- #
def _ablation_lora_kernel(p_ref, w_ref, b_ref, o_ref):
    # p_ref: (tm, 2K) bf16 = [im2col patches | deformed patches]
    # w_ref: (2K, Np) bf16 = [W ; scale * W @ Wd @ Wu]   (Np = C_out padded to 128)
    # b_ref: (1, Np)  f32  = bias + scale * bias @ Wd @ Wu
    acc = jnp.dot(p_ref[...], w_ref[...], preferred_element_type=jnp.float32)
    o_ref[...] = acc + b_ref[...]


# ----------------------------------------------------------------------------- #
# Plain-JAX glue: patch extraction (im2col) and deformable bilinear sampling
# ----------------------------------------------------------------------------- #
def _im2col(x, kh, kw, stride, padding, dilation):
    B, C, H, W = x.shape
    H_out = (H + 2 * padding - dilation * (kh - 1) - 1) // stride + 1
    W_out = (W + 2 * padding - dilation * (kw - 1) - 1) // stride + 1
    xp = jnp.pad(x, ((0, 0), (0, 0), (padding, padding), (padding, padding)))
    cols = []
    for ky in range(kh):
        for kx in range(kw):
            y0 = ky * dilation
            x0 = kx * dilation
            patch = xp[:, :, y0:y0 + stride * H_out:stride, x0:x0 + stride * W_out:stride]
            cols.append(patch)                       # (B, C, H_out, W_out)
    cols = jnp.stack(cols, axis=2)                   # (B, C, kh*kw, H_out, W_out)
    patches = cols.transpose(0, 3, 4, 1, 2).reshape(B * H_out * W_out, C * kh * kw)
    return patches, H_out, W_out


def _deform_im2col(x, offset, kh, kw, stride, padding, dilation):
    """Deformed im2col matching torchvision deform_conv2d sampling semantics
    (zero outside the image, bilinear interpolation).  `offset` is shared across
    batch, shape (2*kh*kw, H_out, W_out)."""
    B, C, H, W = x.shape
    H_out, W_out = offset.shape[1], offset.shape[2]
    base_y = (jnp.arange(H_out) * stride - padding)[:, None].astype(jnp.float32)
    base_x = (jnp.arange(W_out) * stride - padding)[None, :].astype(jnp.float32)

    def gather(yi, xi):
        valid = (yi >= 0) & (yi < H) & (xi >= 0) & (xi < W)
        yc = jnp.clip(yi, 0, H - 1).astype(jnp.int32)
        xc = jnp.clip(xi, 0, W - 1).astype(jnp.int32)
        v = x[:, :, yc, xc]                          # (B, C, H_out, W_out)
        return v * valid[None, None].astype(x.dtype)

    cols = []
    for ky in range(kh):
        for kx in range(kw):
            k = ky * kw + kx
            py = base_y + ky * dilation + offset[2 * k]
            px = base_x + kx * dilation + offset[2 * k + 1]
            y0 = jnp.floor(py)
            x0 = jnp.floor(px)
            y1 = y0 + 1.0
            x1 = x0 + 1.0
            wy1 = py - y0
            wx1 = px - x0
            wy0 = 1.0 - wy1
            wx0 = 1.0 - wx1
            val = (gather(y0, x0) * (wy0 * wx0)[None, None]
                   + gather(y0, x1) * (wy0 * wx1)[None, None]
                   + gather(y1, x0) * (wy1 * wx0)[None, None]
                   + gather(y1, x1) * (wy1 * wx1)[None, None])
            cols.append(val)
    cols = jnp.stack(cols, axis=2)                   # (B, C, kh*kw, H_out, W_out)
    return cols.transpose(0, 3, 4, 1, 2).reshape(B * H_out * W_out, C * kh * kw)


# TODO(synk): offsets_map (the spherical-offset table) is not defined in the source
# file; substitute a deterministic synthetic offset map with the same shape/semantics.
def offsets_map(out_h, out_w, kh, kw):
    yy, xx = jnp.meshgrid(jnp.arange(out_h, dtype=jnp.float32),
                          jnp.arange(out_w, dtype=jnp.float32), indexing="ij")
    k = jnp.arange(2 * kh * kw, dtype=jnp.float32)[:, None, None]
    return 0.5 * jnp.sin(0.37 * k + 0.11 * yy[None] + 0.23 * xx[None])


def _round_up(v, m):
    return ((v + m - 1) // m) * m


# ----------------------------------------------------------------------------- #
# Wrapper
# ----------------------------------------------------------------------------- #
def ablation_sphere_lora_forward(x, weight, bias, wd, wu, scale, offset,
                                 stride=1, padding=1, dilation=1, tm=512):
    B, C_in, H, W = x.shape
    C_out, _, kh, kw = weight.shape

    # im2col for the regular conv + deformed im2col for the deform-conv branch.
    patches, H_out, W_out = _im2col(x, kh, kw, stride, padding, dilation)
    dpatches = _deform_im2col(x, offset, kh, kw, stride, padding, dilation)
    M, K = patches.shape

    # ---- Host-side algebraic pre-fusion of the LoRA chain ------------------- #
    # Valid only for ablation='none' / mix='None' (shared weights, linear chain).
    w_mat = weight.reshape(C_out, K).T.astype(jnp.float32)            # (K, C_out)
    wd_mat = wd[:, :, 0, 0].T.astype(jnp.float32)                     # (C_out, R)
    wu_mat = wu[:, :, 0, 0].T.astype(jnp.float32)                     # (R, C_out)
    scale_f = jnp.asarray(scale, jnp.float32)
    lora_mat = wd_mat @ wu_mat                                        # (C_out, C_out)
    w_lora = scale_f * (w_mat @ lora_mat)                             # (K, C_out)
    b_total = bias.astype(jnp.float32) + scale_f * (bias.astype(jnp.float32) @ lora_mat)

    # Concatenate along the contraction axis -> single matmul per tile.
    w_stack = jnp.concatenate([w_mat, w_lora], axis=0)                # (2K, C_out)
    pcat = jnp.concatenate([patches, dpatches], axis=1)               # (M, 2K)
    Kd = 2 * K

    # Pad the output/lane dimension to a multiple of 128 (lane-dense stores).
    Np = _round_up(max(C_out, 128), 128)
    if Np != C_out:
        w_stack = jnp.pad(w_stack, ((0, 0), (0, Np - C_out)))
        b_total = jnp.pad(b_total, (0, Np - C_out))
    b_total = b_total.reshape(1, Np)

    # Pad rows to a tile multiple (don't over-pad tiny inputs).
    tm_eff = min(tm, _round_up(M, 8))
    Mp = _round_up(M, tm_eff)
    if Mp != M:
        pcat = jnp.pad(pcat, ((0, Mp - M), (0, 0)))

    # bf16 inputs / weights, f32 accumulation inside the kernel.
    pcat = pcat.astype(jnp.bfloat16)
    w_stack = w_stack.astype(jnp.bfloat16)

    out = pl.pallas_call(
        _ablation_lora_kernel,
        out_shape=jax.ShapeDtypeStruct((Mp, Np), jnp.float32),
        grid_spec=pltpu.PrefetchScalarGridSpec(
            num_scalar_prefetch=0,
            grid=(Mp // tm_eff,),
            in_specs=[
                pl.BlockSpec((tm_eff, Kd), lambda i: (i, 0)),   # [patches|dpatches] tile
                pl.BlockSpec((Kd, Np), lambda i: (0, 0)),       # fused weight (resident)
                pl.BlockSpec((1, Np), lambda i: (0, 0)),        # fused bias (resident)
            ],
            out_specs=pl.BlockSpec((tm_eff, Np), lambda i: (i, 0)),
        ),
        compiler_params=pltpu.CompilerParams(
            # Disjoint output tiles per grid step -> safe to shard across TCs (v7x).
            dimension_semantics=("parallel",),
            # Generous but fits v7x's 64 MiB physical VMEM with headroom;
            # above the 16/32 MiB scoped defaults on v5e/v6e/v7x.
            vmem_limit_bytes=48 * 1024 * 1024,
        ),
    )(pcat, w_stack, b_total)

    out = out[:M, :C_out].reshape(B, H_out, W_out, C_out).transpose(0, 3, 1, 2)  # NCHW
    return out


# ----------------------------------------------------------------------------- #
# Pure-JAX (f32) reference for correctness checking
# ----------------------------------------------------------------------------- #
def reference_forward(x, weight, bias, wd, wu, scale, offset, stride, padding, dilation):
    B, C_in, H, W = x.shape
    C_out, _, kh, kw = weight.shape
    h = lax.conv_general_dilated(
        x, weight, window_strides=(stride, stride),
        padding=[(padding, padding), (padding, padding)],
        rhs_dilation=(dilation, dilation),
        dimension_numbers=("NCHW", "OIHW", "NCHW")) + bias[None, :, None, None]
    dpatches = _deform_im2col(x, offset, kh, kw, stride, padding, dilation)
    H_out, W_out = offset.shape[1], offset.shape[2]
    dx = dpatches @ weight.reshape(C_out, -1).T + bias[None, :]
    dx = dx.reshape(B, H_out, W_out, C_out).transpose(0, 3, 1, 2)
    down = jnp.einsum("rc,bchw->brhw", wd[:, :, 0, 0], dx)
    up = jnp.einsum("cr,brhw->bchw", wu[:, :, 0, 0], down)
    return h + scale * up


if __name__ == "__main__":
    key = jax.random.PRNGKey(0)
    B, C_in, C_out, H, W = 2, 4, 8, 16, 16
    kh = kw = 3
    stride, padding, dilation = 1, 1, 1
    low_factor = 1
    R = max(C_out // low_factor, 1)
    H_out = (H + 2 * padding - dilation * (kh - 1) - 1) // stride + 1
    W_out = (W + 2 * padding - dilation * (kw - 1) - 1) // stride + 1

    keys = jax.random.split(key, 5)
    x = jax.random.normal(keys[0], (B, C_in, H, W), jnp.float32)
    # init_conv weight/bias (ablation='none' -> ablation_weight/bias alias these)
    weight = jax.random.normal(keys[1], (C_out, C_in, kh, kw), jnp.float32) * 0.1
    bias = jax.random.normal(keys[2], (C_out,), jnp.float32) * 0.1
    # conv_down: kaiming_uniform_(a=sqrt(5)) -> U(-1/sqrt(fan_in), 1/sqrt(fan_in)), fan_in=C_out
    bound = 1.0 / (C_out ** 0.5)
    wd = jax.random.uniform(keys[3], (R, C_out, 1, 1), jnp.float32, -bound, bound)
    # module zero-inits conv_up; use small nonzero values here so the LoRA path is exercised
    wu = jax.random.normal(keys[4], (C_out, R, 1, 1), jnp.float32) * 0.05
    scale = jnp.float32(1.0)
    offset = offsets_map(H_out, W_out, kh, kw)       # (2*kh*kw, H_out, W_out)

    out = ablation_sphere_lora_forward(x, weight, bias, wd, wu, scale, offset,
                                       stride=stride, padding=padding, dilation=dilation)
    out = jax.block_until_ready(out)

    ref = reference_forward(x, weight, bias, wd, wu, scale, offset,
                            stride, padding, dilation)
    assert out.shape == (B, C_out, H_out, W_out), out.shape
    # Tolerance accounts for bf16 inputs/weights (f32 accumulation) vs. f32 reference.
    assert jnp.allclose(out, ref, atol=3e-2, rtol=3e-2), float(jnp.max(jnp.abs(out - ref)))
    print("KERNEL_OK")
</pallas_src>

<mosaic_0001>
module attributes {stable_mosaic.version = 11 : i64} {
  func.func @_ablation_lora_kernel(%arg0: i32, %arg1: memref<512x72xbf16, #tpu.memory_space<vmem>>, %arg2: memref<72x128xbf16, #tpu.memory_space<vmem>>, %arg3: memref<1x128xf32, #tpu.memory_space<vmem>>, %arg4: memref<512x128xf32, #tpu.memory_space<vmem>>) attributes {dimension_semantics = [#tpu.dimension_semantics<parallel>], iteration_bounds = array<i64: 1>, scalar_prefetch = 0 : i64, scratch_operands = 0 : i64, tpu.core_type = #tpu.core_type<tc>, window_params = [{transform_indices = @transform_0, window_bounds = array<i64: 512, 72>}, {pipeline_mode = #tpu.pipeline_mode<synchronous>, transform_indices = @transform_1, window_bounds = array<i64: 72, 128>}, {pipeline_mode = #tpu.pipeline_mode<synchronous>, transform_indices = @transform_2, window_bounds = array<i64: 1, 128>}, {transform_indices = @transform_3, window_bounds = array<i64: 512, 128>}]} {
    %c0 = arith.constant 0 : index
    %c0_0 = arith.constant 0 : index
    %0 = vector.load %arg1[%c0, %c0_0] : memref<512x72xbf16, #tpu.memory_space<vmem>>, vector<512x72xbf16>
    %c0_1 = arith.constant 0 : index
    %c0_2 = arith.constant 0 : index
    %1 = vector.load %arg2[%c0_1, %c0_2] : memref<72x128xbf16, #tpu.memory_space<vmem>>, vector<72x128xbf16>
    %cst = arith.constant dense<0.000000e+00> : vector<512x128xf32>
    %2 = tpu.matmul %0, %1, %cst {dimension_numbers = #tpu.dot_dimension_numbers<[1], [0], [0], [1], [0, 0, 1, 1], [], []>} : vector<512x72xbf16>, vector<72x128xbf16>, vector<512x128xf32> -> vector<512x128xf32>
    %c0_3 = arith.constant 0 : index
    %c0_4 = arith.constant 0 : index
    %3 = vector.load %arg3[%c0_3, %c0_4] : memref<1x128xf32, #tpu.memory_space<vmem>>, vector<1x128xf32>
    %4 = vector.broadcast %3 : vector<1x128xf32> to vector<512x128xf32>
    %5 = arith.addf %2, %4 : vector<512x128xf32>
    %c0_5 = arith.constant 0 : index
    %c0_6 = arith.constant 0 : index
    %6 = vector.load %arg4[%c0_5, %c0_6] : memref<512x128xf32, #tpu.memory_space<vmem>>, vector<512x128xf32>
    tpu.vector_store %arg4[%c0_5, %c0_6], %5 {strides = array<i32>} : memref<512x128xf32, #tpu.memory_space<vmem>>, vector<512x128xf32>,
    return
  }
  func.func @transform_0(%arg0: i32) -> (i32, i32) {
    %c0_i32 = arith.constant 0 : i32
    %c0_i32_0 = arith.constant 0 : i32
    return %arg0, %c0_i32 : i32, i32
  }
  func.func @transform_1(%arg0: i32) -> (i32, i32) {
    %c0_i32 = arith.constant 0 : i32
    %c0_i32_0 = arith.constant 0 : i32
    %c0_i32_1 = arith.constant 0 : i32
    return %c0_i32, %c0_i32_0 : i32, i32
  }
  func.func @transform_2(%arg0: i32) -> (i32, i32) {
    %c0_i32 = arith.constant 0 : i32
    %c0_i32_0 = arith.constant 0 : i32
    %c0_i32_1 = arith.constant 0 : i32
    return %c0_i32, %c0_i32_0 : i32, i32
  }
  func.func @transform_3(%arg0: i32) -> (i32, i32) {
    %c0_i32 = arith.constant 0 : i32
    %c0_i32_0 = arith.constant 0 : i32
    return %arg0, %c0_i32 : i32, i32
  }
}

</mosaic_0001>

<bundles_post_ra>
// kernel: tpu_custom_call.1
= control target key start
LH: loop header
LB: loop body
LE: loop exit
PB: predicated region body
PF: predicated region fallthrough
CT: control target
= control target key end

     0   :  { %vm377_vm0 = vcmask 1043456   ;;  %s1127_s0 = inlined_call_operand.vmem [shape: bf16[512,72], index: 0, kind: input, shape index: {}]   ;;  %s1128_s1 = inlined_call_operand.vmem [shape: bf16[72,128], index: 1, kind: input, shape index: {}]   ;;  %s1129_s2 = inlined_call_operand.vmem [shape: f32[1,128], index: 2, kind: input, shape index: {}]   ;;  %s1130_s3 = inlined_call_operand.hbm [shape: f32[512,128], index: 3, kind: output, shape index: {}]  }
   0x1   :  { %v88_v0 = vld [vmem:[%s1128_s1 + $0x20] sm:$0xf] }
   0x2   :  { %v270_v1 = vunpack.c.l.b16 %v88_v0 }
   0x4   :  { %v275_v2 = vpack.c.b16 %v270_v1, %v270_v1 }
   0x5   :  { %8 = vsyncpa [#allocation3], 0  ;;  %v843_v4 = vld [vmem:[%s1128_s1 + $0x18] sm:$0xff]  ;;  %v842_v5 = vld [vmem:[%s1128_s1 + $0x10] sm:$0xff]  ;;  %vm280_vm1 = vcmask 588800   ;;  %s620_s6 = sshll.u32 %s1130_s3, 4  ;;  %s621_s6 = int_to_ptr.hbm [resolvable:$true] %s620_s6 }
   0x6   :  { %v379_v3 = vsel %vm377_vm0, %v275_v2, 0  ;;  %v841_v6 = vld [vmem:[%s1128_s1 + $0x8] sm:$0xff]  ;;  %v840_v7 = vld [vmem:[%s1128_s1] sm:$0xff]  ;;  %v810_v16 = vld [vmem:[%s1127_s0 + $0x10] sm:$0xff]  ;;  %s890_s7 = smov 128   ;;  %s891_s8 = smov 8  }
   0x7   :  { %384 = vmatpush.bf16.msra.mxu0 %v379_v3  ;;  %844 = vmatpush.bf16.msra.mxu1 %v379_v3  ;;  %v808_v8 = vld [vmem:[%s1127_s0] sm:$0xff]  ;;  %v809_v12 = vld [vmem:[%s1127_s0 + $0x8] sm:$0xff]  ;;  %v818_v17 = vld [vmem:[%s1127_s0 + $0x50] sm:$0xff] }
   0x8   :  { %845 = vmatpush.bf16.msra.mxu2 %v379_v3  ;;  %846 = vmatpush.bf16.msra.mxu3 %v379_v3  ;;  %v816_v9 = vld [vmem:[%s1127_s0 + $0x40] sm:$0xff]  ;;  %v817_v13 = vld [vmem:[%s1127_s0 + $0x48] sm:$0xff]  ;;  %v826_v18 = vld [vmem:[%s1127_s0 + $0x90] sm:$0xff] }
   0x9   :  { %v824_v10 = vld [vmem:[%s1127_s0 + $0x80] sm:$0xff]  ;;  %v825_v14 = vld [vmem:[%s1127_s0 + $0x88] sm:$0xff]  ;;  %v834_v19 = vld [vmem:[%s1127_s0 + $0xd0] sm:$0xff] }
   0xa   :  { %v832_v11 = vld [vmem:[%s1127_s0 + $0xc0] sm:$0xff]  ;;  %v833_v15 = vld [vmem:[%s1127_s0 + $0xc8] sm:$0xff]  ;;  %v811_v20 = vld [vmem:[%s1127_s0 + $0x18] sm:$0xff] }
   0xb   :  { %385 = vmatpush.bf16.msra.mxu0 %v843_v4  ;;  %847 = vmatpush.bf16.msra.mxu1 %v843_v4  ;;  %v819_v21 = vld [vmem:[%s1127_s0 + $0x58] sm:$0xff]  ;;  %v812_v24 = vld [vmem:[%s1127_s0 + $0x20] sm:$0xff]  ;;  %v813_v28 = vld [vmem:[%s1127_s0 + $0x28] sm:$0xff] }
   0xc   :  { %848 = vmatpush.bf16.msra.mxu2 %v843_v4  ;;  %849 = vmatpush.bf16.msra.mxu3 %v843_v4  ;;  %v827_v22 = vld [vmem:[%s1127_s0 + $0x98] sm:$0xff]  ;;  %v820_v25 = vld [vmem:[%s1127_s0 + $0x60] sm:$0xff]  ;;  %v821_v29 = vld [vmem:[%s1127_s0 + $0x68] sm:$0xff] }
   0xd   :  { %v835_v23 = vld [vmem:[%s1127_s0 + $0xd8] sm:$0xff]  ;;  %v828_v26 = vld [vmem:[%s1127_s0 + $0xa0] sm:$0xff]  ;;  %v829_v30 = vld [vmem:[%s1127_s0 + $0xa8] sm:$0xff] }
   0xe   :  { %v836_v27 = vld [vmem:[%s1127_s0 + $0xe0] sm:$0xff]  ;;  %v837_v31 = vld [vmem:[%s1127_s0 + $0xe8] sm:$0xff]  ;;  %v814_v32 = vld [vmem:[%s1127_s0 + $0x30] sm:$0xff] }
   0xf   :  { %386 = vmatpush.bf16.msra.mxu0 %v842_v5  ;;  %850 = vmatpush.bf16.msra.mxu1 %v842_v5  ;;  %v822_v33 = vld [vmem:[%s1127_s0 + $0x70] sm:$0xff]  ;;  %v815_v36 = vld [vmem:[%s1127_s0 + $0x38] sm:$0xff]  ;;  %v1058_v40 = vld [vmem:[%s1129_s2] ss:$0 sm:$0xff] }
  0x10   :  { %851 = vmatpush.bf16.msra.mxu2 %v842_v5  ;;  %852 = vmatpush.bf16.msra.mxu3 %v842_v5  ;;  %v830_v34 = vld [vmem:[%s1127_s0 + $0xb0] sm:$0xff]  ;;  %v823_v37 = vld [vmem:[%s1127_s0 + $0x78] sm:$0xff] }
  0x11   :  { %v838_v35 = vld [vmem:[%s1127_s0 + $0xf0] sm:$0xff]  ;;  %v831_v38 = vld [vmem:[%s1127_s0 + $0xb8] sm:$0xff] }
  0x12   :  { %v839_v39 = vld [vmem:[%s1127_s0 + $0xf8] sm:$0xff]  ;;  %s889_s0 = smov [#allocation2]  }
  0x13   :  { %387 = vmatpush.bf16.msra.mxu0 %v841_v6  ;;  %853 = vmatpush.bf16.msra.mxu1 %v841_v6  ;;  %s618_s2 = sshll.u32 %s889_s0, 4  ;;  %s619_s2 = int_to_ptr.vmem [resolvable:$true] %s618_s2 }
  0x14   :  { %854 = vmatpush.bf16.msra.mxu2 %v841_v6  ;;  %855 = vmatpush.bf16.msra.mxu3 %v841_v6 }
  0x17   :  { %388 = vmatpush.bf16.msra.mxu0 %v840_v7  ;;  %856 = vmatpush.bf16.msra.mxu1 %v840_v7 }
  0x18   :  { %857 = vmatpush.bf16.msra.mxu2 %v840_v7  ;;  %858 = vmatpush.bf16.msra.mxu3 %v840_v7 }
  0x1a   :  { %776 = vmatmul.msk.bf16.vlgmr.msra.gmra.mxu0 %vm280_vm1, %v808_v8  ;;  %784 = vmatmul.msk.bf16.vlgmr.msra.gmra.mxu1 %vm280_vm1, %v816_v9 }
  0x1b   :  { %792 = vmatmul.msk.bf16.vlgmr.msra.gmra.mxu2 %vm280_vm1, %v824_v10  ;;  %800 = vmatmul.msk.bf16.vlgmr.msra.gmra.mxu3 %vm280_vm1, %v832_v11 }
  0x2a   :  { %777 = vmatmul.msk.bf16.gmra.mxu0 %vm280_vm1, %v809_v12  ;;  %785 = vmatmul.msk.bf16.gmra.mxu1 %vm280_vm1, %v817_v13 }
  0x2b   :  { %793 = vmatmul.msk.bf16.gmra.mxu2 %vm280_vm1, %v825_v14  ;;  %801 = vmatmul.msk.bf16.gmra.mxu3 %vm280_vm1, %v833_v15 }
  0x3a   :  { %778 = vmatmul.msk.bf16.gmra.mxu0 %vm280_vm1, %v810_v16  ;;  %786 = vmatmul.msk.bf16.gmra.mxu1 %vm280_vm1, %v818_v17 }
  0x3b   :  { %794 = vmatmul.msk.bf16.gmra.mxu2 %vm280_vm1, %v826_v18  ;;  %802 = vmatmul.msk.bf16.gmra.mxu3 %vm280_vm1, %v834_v19 }
  0x4a   :  { %779 = vmatmul.msk.bf16.gmra.mxu0 %vm280_vm1, %v811_v20  ;;  %787 = vmatmul.msk.bf16.gmra.mxu1 %vm280_vm1, %v819_v21 }
  0x4b   :  { %795 = vmatmul.msk.bf16.gmra.mxu2 %vm280_vm1, %v827_v22  ;;  %803 = vmatmul.msk.bf16.gmra.mxu3 %vm280_vm1, %v835_v23 }
  0x5a   :  { %780 = vmatmul.msk.bf16.gmra.mxu0 %vm280_vm1, %v812_v24  ;;  %788 = vmatmul.msk.bf16.gmra.mxu1 %vm280_vm1, %v820_v25 }
  0x5b   :  { %796 = vmatmul.msk.bf16.gmra.mxu2 %vm280_vm1, %v828_v26  ;;  %804 = vmatmul.msk.bf16.gmra.mxu3 %vm280_vm1, %v836_v27 }
  0x6a   :  { %781 = vmatmul.msk.bf16.gmra.mxu0 %vm280_vm1, %v813_v28  ;;  %789 = vmatmul.msk.bf16.gmra.mxu1 %vm280_vm1, %v821_v29 }
  0x6b   :  { %797 = vmatmul.msk.bf16.gmra.mxu2 %vm280_vm1, %v829_v30  ;;  %805 = vmatmul.msk.bf16.gmra.mxu3 %vm280_vm1, %v837_v31 }
  0x7a   :  { %782 = vmatmul.msk.bf16.gmra.mxu0 %vm280_vm1, %v814_v32  ;;  %790 = vmatmul.msk.bf16.gmra.mxu1 %vm280_vm1, %v822_v33 }
  0x7b   :  { %798 = vmatmul.msk.bf16.gmra.mxu2 %vm280_vm1, %v830_v34  ;;  %806 = vmatmul.msk.bf16.gmra.mxu3 %vm280_vm1, %v838_v35 }
  0x8a   :  { %783 = vmatmul.msk.bf16.gmra.mxu0 %vm280_vm1, %v815_v36  ;;  %791 = vmatmul.msk.bf16.gmra.mxu1 %vm280_vm1, %v823_v37 }
  0x8b   :  { %799 = vmatmul.msk.bf16.gmra.mxu2 %vm280_vm1, %v831_v38  ;;  %807 = vmatmul.msk.bf16.gmra.mxu3 %vm280_vm1, %v839_v39 }
  0x97   :  { %v390_v41 = vpop.f32.mrf.mxu0  ;;  %v430_v42 = vpop.f32.mrf.mxu1 }
  0x98   :  { %v391_v43 = vadd.f32 %v1058_v40, %v390_v41  ;;  %v431_v44 = vadd.f32 %v1058_v40, %v430_v42 }
  0x9a   :  { %550 = vst [vmem:[#allocation2] sm:$0xff] %v391_v43 }
  0x9b   :  { %566 = vst [vmem:[#allocation2 + $0x80] sm:$0xff] %v431_v44 }
  0x9e   :  { %v470_v45 = vpop.f32.mrf.mxu2  ;;  %v510_v46 = vpop.f32.mrf.mxu3 }
  0x9f   :  { %v471_v47 = vadd.f32 %v1058_v40, %v470_v45  ;;  %v511_v48 = vadd.f32 %v1058_v40, %v510_v46  ;;  %v392_v49 = vpop.f32.mrf.mxu0  ;;  %v432_v50 = vpop.f32.mrf.mxu1 }
  0xa0   :  { %v393_v51 = vadd.f32 %v1058_v40, %v392_v49  ;;  %v433_v52 = vadd.f32 %v1058_v40, %v432_v50 }
  0xa1   :  { %582 = vst [vmem:[#allocation2 + $0x100] sm:$0xff] %v471_v47 }
  0xa2   :  { %598 = vst [vmem:[#allocation2 + $0x180] sm:$0xff] %v511_v48 }
  0xa3   :  { %551 = vst [vmem:[#allocation2 + $0x8] sm:$0xff] %v393_v51 }
  0xa4   :  { %567 = vst [vmem:[#allocation2 + $0x88] sm:$0xff] %v433_v52 }
  0xa6   :  { %v472_v53 = vpop.f32.mrf.mxu2  ;;  %v512_v54 = vpop.f32.mrf.mxu3 }
  0xa7   :  { %v473_v55 = vadd.f32 %v1058_v40, %v472_v53  ;;  %v513_v56 = vadd.f32 %v1058_v40, %v512_v54  ;;  %v395_v57 = vpop.f32.mrf.mxu0  ;;  %v435_v58 = vpop.f32.mrf.mxu1 }
  0xa8   :  { %v396_v59 = vadd.f32 %v1058_v40, %v395_v57  ;;  %v436_v60 = vadd.f32 %v1058_v40, %v435_v58 }
  0xa9   :  { %583 = vst [vmem:[#allocation2 + $0x108] sm:$0xff] %v473_v55 }
  0xaa   :  { %599 = vst [vmem:[#allocation2 + $0x188] sm:$0xff] %v513_v56 }
  0xab   :  { %552 = vst [vmem:[#allocation2 + $0x10] sm:$0xff] %v396_v59 }
  0xac   :  { %568 = vst [vmem:[#allocation2 + $0x90] sm:$0xff] %v436_v60 }
  0xae   :  { %v475_v61 = vpop.f32.mrf.mxu2  ;;  %v515_v62 = vpop.f32.mrf.mxu3 }
  0xaf   :  { %v476_v63 = vadd.f32 %v1058_v40, %v475_v61  ;;  %v516_v0 = vadd.f32 %v1058_v40, %v515_v62  ;;  %v397_v1 = vpop.f32.mrf.mxu0  ;;  %v437_v2 = vpop.f32.mrf.mxu1 }
  0xb0   :  { %v398_v3 = vadd.f32 %v1058_v40, %v397_v1  ;;  %v438_v4 = vadd.f32 %v1058_v40, %v437_v2 }
  0xb1   :  { %584 = vst [vmem:[#allocation2 + $0x110] sm:$0xff] %v476_v63 }
  0xb2   :  { %600 = vst [vmem:[#allocation2 + $0x190] sm:$0xff] %v516_v0 }
  0xb3   :  { %553 = vst [vmem:[#allocation2 + $0x18] sm:$0xff] %v398_v3 }
  0xb4   :  { %569 = vst [vmem:[#allocation2 + $0x98] sm:$0xff] %v438_v4 }
  0xb6   :  { %v477_v5 = vpop.f32.mrf.mxu2  ;;  %v517_v6 = vpop.f32.mrf.mxu3 }
  0xb7   :  { %v478_v7 = vadd.f32 %v1058_v40, %v477_v5  ;;  %v518_v8 = vadd.f32 %v1058_v40, %v517_v6  ;;  %v400_v9 = vpop.f32.mrf.mxu0  ;;  %v440_v10 = vpop.f32.mrf.mxu1 }
  0xb8   :  { %v401_v11 = vadd.f32 %v1058_v40, %v400_v9  ;;  %v441_v12 = vadd.f32 %v1058_v40, %v440_v10 }
  0xb9   :  { %585 = vst [vmem:[#allocation2 + $0x118] sm:$0xff] %v478_v7 }
  0xba   :  { %601 = vst [vmem:[#allocation2 + $0x198] sm:$0xff] %v518_v8 }
  0xbb   :  { %554 = vst [vmem:[#allocation2 + $0x20] sm:$0xff] %v401_v11 }
  0xbc   :  { %570 = vst [vmem:[#allocation2 + $0xa0] sm:$0xff] %v441_v12 }
  0xbe   :  { %v480_v13 = vpop.f32.mrf.mxu2  ;;  %v520_v14 = vpop.f32.mrf.mxu3 }
  0xbf   :  { %v481_v15 = vadd.f32 %v1058_v40, %v480_v13  ;;  %v521_v16 = vadd.f32 %v1058_v40, %v520_v14  ;;  %v402_v17 = vpop.f32.mrf.mxu0  ;;  %v442_v18 = vpop.f32.mrf.mxu1 }
  0xc0   :  { %v403_v19 = vadd.f32 %v1058_v40, %v402_v17  ;;  %v443_v20 = vadd.f32 %v1058_v40, %v442_v18 }
  0xc1   :  { %586 = vst [vmem:[#allocation2 + $0x120] sm:$0xff] %v481_v15 }
  0xc2   :  { %602 = vst [vmem:[#allocation2 + $0x1a0] sm:$0xff] %v521_v16 }
  0xc3   :  { %555 = vst [vmem:[#allocation2 + $0x28] sm:$0xff] %v403_v19 }
  0xc4   :  { %571 = vst [vmem:[#allocation2 + $0xa8] sm:$0xff] %v443_v20 }
  0xc6   :  { %v482_v21 = vpop.f32.mrf.mxu2  ;;  %v522_v22 = vpop.f32.mrf.mxu3 }
  0xc7   :  { %v483_v23 = vadd.f32 %v1058_v40, %v482_v21  ;;  %v523_v24 = vadd.f32 %v1058_v40, %v522_v22  ;;  %v405_v25 = vpop.f32.mrf.mxu0  ;;  %v445_v26 = vpop.f32.mrf.mxu1 }
  0xc8   :  { %v406_v27 = vadd.f32 %v1058_v40, %v405_v25  ;;  %v446_v28 = vadd.f32 %v1058_v40, %v445_v26 }
  0xc9   :  { %587 = vst [vmem:[#allocation2 + $0x128] sm:$0xff] %v483_v23 }
  0xca   :  { %603 = vst [vmem:[#allocation2 + $0x1a8] sm:$0xff] %v523_v24 }
  0xcb   :  { %556 = vst [vmem:[#allocation2 + $0x30] sm:$0xff] %v406_v27 }
  0xcc   :  { %572 = vst [vmem:[#allocation2 + $0xb0] sm:$0xff] %v446_v28 }
  0xce   :  { %v485_v29 = vpop.f32.mrf.mxu2  ;;  %v525_v30 = vpop.f32.mrf.mxu3 }
  0xcf   :  { %v486_v31 = vadd.f32 %v1058_v40, %v485_v29  ;;  %v526_v32 = vadd.f32 %v1058_v40, %v525_v30  ;;  %v407_v33 = vpop.f32.mrf.mxu0  ;;  %v447_v34 = vpop.f32.mrf.mxu1 }
  0xd0   :  { %v408_v35 = vadd.f32 %v1058_v40, %v407_v33  ;;  %v448_v36 = vadd.f32 %v1058_v40, %v447_v34 }
  0xd1   :  { %588 = vst [vmem:[#allocation2 + $0x130] sm:$0xff] %v486_v31 }
  0xd2   :  { %604 = vst [vmem:[#allocation2 + $0x1b0] sm:$0xff] %v526_v32 }
  0xd3   :  { %557 = vst [vmem:[#allocation2 + $0x38] sm:$0xff] %v408_v35 }
  0xd4   :  { %573 = vst [vmem:[#allocation2 + $0xb8] sm:$0xff] %v448_v36 }
  0xd6   :  { %v487_v37 = vpop.f32.mrf.mxu2  ;;  %v527_v38 = vpop.f32.mrf.mxu3 }
  0xd7   :  { %v488_v39 = vadd.f32 %v1058_v40, %v487_v37  ;;  %v528_v41 = vadd.f32 %v1058_v40, %v527_v38  ;;  %v410_v42 = vpop.f32.mrf.mxu0  ;;  %v450_v43 = vpop.f32.mrf.mxu1 }
  0xd8   :  { %v411_v44 = vadd.f32 %v1058_v40, %v410_v42  ;;  %v451_v45 = vadd.f32 %v1058_v40, %v450_v43 }
  0xd9   :  { %589 = vst [vmem:[#allocation2 + $0x138] sm:$0xff] %v488_v39 }
  0xda   :  { %605 = vst [vmem:[#allocation2 + $0x1b8] sm:$0xff] %v528_v41 }
  0xdb   :  { %558 = vst [vmem:[#allocation2 + $0x40] sm:$0xff] %v411_v44 }
  0xdc   :  { %574 = vst [vmem:[#allocation2 + $0xc0] sm:$0xff] %v451_v45 }
  0xde   :  { %v490_v46 = vpop.f32.mrf.mxu2  ;;  %v530_v47 = vpop.f32.mrf.mxu3 }
  0xdf   :  { %v491_v48 = vadd.f32 %v1058_v40, %v490_v46  ;;  %v531_v49 = vadd.f32 %v1058_v40, %v530_v47  ;;  %v412_v50 = vpop.f32.mrf.mxu0  ;;  %v452_v51 = vpop.f32.mrf.mxu1 }
  0xe0   :  { %v413_v52 = vadd.f32 %v1058_v40, %v412_v50  ;;  %v453_v53 = vadd.f32 %v1058_v40, %v452_v51 }
  0xe1   :  { %590 = vst [vmem:[#allocation2 + $0x140] sm:$0xff] %v491_v48 }
  0xe2   :  { %606 = vst [vmem:[#allocation2 + $0x1c0] sm:$0xff] %v531_v49 }
  0xe3   :  { %559 = vst [vmem:[#allocation2 + $0x48] sm:$0xff] %v413_v52 }
  0xe4   :  { %575 = vst [vmem:[#allocation2 + $0xc8] sm:$0xff] %v453_v53 }
  0xe6   :  { %v492_v54 = vpop.f32.mrf.mxu2  ;;  %v532_v55 = vpop.f32.mrf.mxu3 }
  0xe7   :  { %v493_v56 = vadd.f32 %v1058_v40, %v492_v54  ;;  %v533_v57 = vadd.f32 %v1058_v40, %v532_v55  ;;  %v415_v58 = vpop.f32.mrf.mxu0  ;;  %v455_v59 = vpop.f32.mrf.mxu1 }
  0xe8   :  { %v416_v60 = vadd.f32 %v1058_v40, %v415_v58  ;;  %v456_v61 = vadd.f32 %v1058_v40, %v455_v59 }
  0xe9   :  { %591 = vst [vmem:[#allocation2 + $0x148] sm:$0xff] %v493_v56 }
  0xea   :  { %607 = vst [vmem:[#allocation2 + $0x1c8] sm:$0xff] %v533_v57 }
  0xeb   :  { %560 = vst [vmem:[#allocation2 + $0x50] sm:$0xff] %v416_v60 }
  0xec   :  { %576 = vst [vmem:[#allocation2 + $0xd0] sm:$0xff] %v456_v61 }
  0xee   :  { %v495_v62 = vpop.f32.mrf.mxu2  ;;  %v535_v63 = vpop.f32.mrf.mxu3 }
  0xef   :  { %v496_v0 = vadd.f32 %v1058_v40, %v495_v62  ;;  %v536_v1 = vadd.f32 %v1058_v40, %v535_v63  ;;  %v417_v2 = vpop.f32.mrf.mxu0  ;;  %v457_v3 = vpop.f32.mrf.mxu1 }
  0xf0   :  { %v418_v4 = vadd.f32 %v1058_v40, %v417_v2  ;;  %v458_v5 = vadd.f32 %v1058_v40, %v457_v3 }
  0xf1   :  { %592 = vst [vmem:[#allocation2 + $0x150] sm:$0xff] %v496_v0 }
  0xf2   :  { %608 = vst [vmem:[#allocation2 + $0x1d0] sm:$0xff] %v536_v1 }
  0xf3   :  { %561 = vst [vmem:[#allocation2 + $0x58] sm:$0xff] %v418_v4 }
  0xf4   :  { %577 = vst [vmem:[#allocation2 + $0xd8] sm:$0xff] %v458_v5 }
  0xf6   :  { %v497_v6 = vpop.f32.mrf.mxu2  ;;  %v537_v7 = vpop.f32.mrf.mxu3 }
  0xf7   :  { %v498_v8 = vadd.f32 %v1058_v40, %v497_v6  ;;  %v538_v9 = vadd.f32 %v1058_v40, %v537_v7  ;;  %v420_v10 = vpop.f32.mrf.mxu0  ;;  %v460_v11 = vpop.f32.mrf.mxu1 }
  0xf8   :  { %v421_v12 = vadd.f32 %v1058_v40, %v420_v10  ;;  %v461_v13 = vadd.f32 %v1058_v40, %v460_v11 }
  0xf9   :  { %593 = vst [vmem:[#allocation2 + $0x158] sm:$0xff] %v498_v8 }
  0xfa   :  { %609 = vst [vmem:[#allocation2 + $0x1d8] sm:$0xff] %v538_v9 }
  0xfb   :  { %562 = vst [vmem:[#allocation2 + $0x60] sm:$0xff] %v421_v12 }
  0xfc   :  { %578 = vst [vmem:[#allocation2 + $0xe0] sm:$0xff] %v461_v13 }
  0xfe   :  { %v500_v14 = vpop.f32.mrf.mxu2  ;;  %v540_v15 = vpop.f32.mrf.mxu3 }
  0xff   :  { %v501_v16 = vadd.f32 %v1058_v40, %v500_v14  ;;  %v541_v17 = vadd.f32 %v1058_v40, %v540_v15  ;;  %v422_v18 = vpop.f32.mrf.mxu0  ;;  %v462_v19 = vpop.f32.mrf.mxu1 }
 0x100   :  { %v423_v20 = vadd.f32 %v1058_v40, %v422_v18  ;;  %v463_v21 = vadd.f32 %v1058_v40, %v462_v19 }
 0x101   :  { %594 = vst [vmem:[#allocation2 + $0x160] sm:$0xff] %v501_v16 }
 0x102   :  { %610 = vst [vmem:[#allocation2 + $0x1e0] sm:$0xff] %v541_v17 }
 0x103   :  { %563 = vst [vmem:[#allocation2 + $0x68] sm:$0xff] %v423_v20 }
 0x104   :  { %579 = vst [vmem:[#allocation2 + $0xe8] sm:$0xff] %v463_v21 }
 0x106   :  { %v502_v22 = vpop.f32.mrf.mxu2  ;;  %v542_v23 = vpop.f32.mrf.mxu3 }
 0x107   :  { %v503_v24 = vadd.f32 %v1058_v40, %v502_v22  ;;  %v543_v25 = vadd.f32 %v1058_v40, %v542_v23  ;;  %v425_v26 = vpop.f32.mrf.mxu0  ;;  %v465_v27 = vpop.f32.mrf.mxu1 }
 0x108   :  { %v426_v28 = vadd.f32 %v1058_v40, %v425_v26  ;;  %v466_v29 = vadd.f32 %v1058_v40, %v465_v27 }
 0x109   :  { %595 = vst [vmem:[#allocation2 + $0x168] sm:$0xff] %v503_v24 }
 0x10a   :  { %611 = vst [vmem:[#allocation2 + $0x1e8] sm:$0xff] %v543_v25 }
 0x10b   :  { %564 = vst [vmem:[#allocation2 + $0x70] sm:$0xff] %v426_v28 }
 0x10c   :  { %580 = vst [vmem:[#allocation2 + $0xf0] sm:$0xff] %v466_v29 }
 0x10e   :  { %v505_v30 = vpop.f32.mrf.mxu2  ;;  %v545_v31 = vpop.f32.mrf.mxu3 }
 0x10f   :  { %v506_v32 = vadd.f32 %v1058_v40, %v505_v30  ;;  %v546_v33 = vadd.f32 %v1058_v40, %v545_v31  ;;  %v427_v34 = vpop.f32.mrf.mxu0  ;;  %v467_v35 = vpop.f32.mrf.mxu1 }
 0x110   :  { %v428_v36 = vadd.f32 %v1058_v40, %v427_v34  ;;  %v468_v37 = vadd.f32 %v1058_v40, %v467_v35 }
 0x111   :  { %596 = vst [vmem:[#allocation2 + $0x170] sm:$0xff] %v506_v32 }
 0x112   :  { %612 = vst [vmem:[#allocation2 + $0x1f0] sm:$0xff] %v546_v33 }
 0x113   :  { %565 = vst [vmem:[#allocation2 + $0x78] sm:$0xff] %v428_v36 }
 0x114   :  { %581 = vst [vmem:[#allocation2 + $0xf8] sm:$0xff] %v468_v37 }
 0x116   :  { %v507_v38 = vpop.f32.mrf.mxu2  ;;  %v547_v39 = vpop.f32.mrf.mxu3 }
 0x117   :  { %v508_v41 = vadd.f32 %v1058_v40, %v507_v38  ;;  %v548_v42 = vadd.f32 %v1058_v40, %v547_v39 }
 0x119   :  { %597 = vst [vmem:[#allocation2 + $0x178] sm:$0xff] %v508_v41 }
 0x11a   :  { %613 = vst [vmem:[#allocation2 + $0x1f8] sm:$0xff] %v548_v42 }
 0x11b   :  { %626 = dma.vmem_to_hbm [thread:$0]  %s619_s2, 8192, %s621_s6, [#allocation3], %s890_s7, %s890_s7, %s891_s8  }
 0x11c   :  { %887 = dma.done.wait [#allocation3], 8192  }
 0x11d   :  { %888 = vsyncadd [#allocation3], 4294959104 }
 0x11e   :  { %631 = vsyncpa [#allocation3], 1 }

</bundles_post_ra>
